<compile_context>
chip_gen: v6e
topology: v6e:2x2x1
jax: 0.10.0
libtpu: 0.0.40
codegen_flags: <defaults>
</compile_context>

<pallas_src>
import jax
import jax.numpy as jnp
import numpy as np
from jax.experimental import pallas as pl

LANES = 128  # TPU lane width; label dim is zero-padded up to this for dense stores


# ---------------------------------------------------------------------------
# Single fused kernel: graph propagation + folded classifier
# ---------------------------------------------------------------------------
def fused_gcn_kernel(x_ref, a_ref, nin_ref,
                     wfx_ref, wfax_ref, wfaax_ref, wn_ref, b_ref,
                     out_ref):
    """Whole GCN forward for the full batch in one invocation.

    x_ref     : (B, N, F0)   node embeddings
    a_ref     : (B, N, N)    link matrix
    nin_ref   : (B, 3*F0)    concat(cls, sub, obj)
    wfx_ref   : (N*F0, Lp)   folded (W0/3) @ Wc_gcn[n], node-major rows
    wfax_ref  : (N*F0, Lp)   folded (W1/3) @ Wc_gcn[n]
    wfaax_ref : (N*F0, Lp)   folded (W2/3) @ Wc_gcn[n]
    wn_ref    : (3*F0, Lp)   folded Wn @ Wc_normal
    b_ref     : (1, Lp)      folded bias
    out_ref   : (B, Lp)      lane-padded logits
    """
    x = x_ref[...]                                   # (B, N, F0)
    a = a_ref[...]                                   # (B, N, N)
    B, N, F0 = x.shape

    # Graph propagation on the MXU.  A@X and A@A depend only on inputs (no
    # serial ax->aax chain); A@A is N^3 MACs vs N^2*F0 for A@(A@X).
    ax = jnp.einsum("bij,bjf->bif", a, x, preferred_element_type=jnp.float32)
    a2 = jnp.einsum("bij,bjk->bik", a, a, preferred_element_type=jnp.float32)
    aax = jnp.einsum("bij,bjf->bif", a2, x, preferred_element_type=jnp.float32)

    # Node-major flatten (B, N, F0) -> (B, N*F0) so each folded weight
    # contracts (node, feature) in a single MXU matmul: no lane concat, no
    # per-node loop / slice relayouts.
    x2 = x.reshape(B, N * F0)
    ax2 = ax.reshape(B, N * F0)
    aax2 = aax.reshape(B, N * F0)

    out = (jnp.dot(x2, wfx_ref[...], preferred_element_type=jnp.float32)
           + jnp.dot(ax2, wfax_ref[...], preferred_element_type=jnp.float32)
           + jnp.dot(aax2, wfaax_ref[...], preferred_element_type=jnp.float32)
           + jnp.dot(nin_ref[...], wn_ref[...], preferred_element_type=jnp.float32)
           + b_ref[...])
    out_ref[...] = out                               # (B, Lp) lane-dense store


def run_fused(x, a, nin, Wfx, Wfax, Wfaax, Wnorm, bias):
    B, N, F0 = x.shape
    Lp = Wfx.shape[1]

    def full(arr):
        zeros = (0,) * arr.ndim
        return pl.BlockSpec(arr.shape, lambda z=zeros: z)

    flops = 2 * (B * N * N * F0            # A @ X
                 + B * N * N * N           # A @ A
                 + B * N * N * F0          # A^2 @ X
                 + 3 * B * (N * F0) * Lp   # folded gcn-branch matmuls
                 + B * (3 * F0) * Lp)      # folded normal-path matmul
    bytes_accessed = 4 * (x.size + a.size + nin.size + Wfx.size + Wfax.size
                          + Wfaax.size + Wnorm.size + bias.size + B * Lp)

    # Grid-less single step: the whole (toy-sized) working set fits trivially
    # in VMEM.  At production scale: grid over batch, block (Bt, N, F0) /
    # (Bt, N, N) / (Bt, Lp), dimension_semantics=("parallel",), bf16 operands.
    return pl.pallas_call(
        fused_gcn_kernel,
        out_shape=jax.ShapeDtypeStruct((B, Lp), jnp.float32),
        in_specs=[full(x), full(a), full(nin),
                  full(Wfx), full(Wfax), full(Wfaax), full(Wnorm), full(bias)],
        out_specs=pl.BlockSpec((B, Lp), lambda: (0, 0)),
        cost_estimate=pl.CostEstimate(flops=flops, transcendentals=0,
                                      bytes_accessed=bytes_accessed),
    )(x, a, nin, Wfx, Wfax, Wfaax, Wnorm, bias)


# ---------------------------------------------------------------------------
# Full forward: trace-time parameter folding + single pallas_call
# ---------------------------------------------------------------------------
def gcn_forward(input_embeddings, link_matrix, cls_emb, sub_emb, obj_emb, params):
    B, N, F0 = input_embeddings.shape
    F1 = params["W0"].shape[1]
    Fn = params["Wn"].shape[1]
    L = params["Wc"].shape[1]
    Lp = ((L + LANES - 1) // LANES) * LANES

    normal_input = jnp.concatenate([cls_emb, sub_emb, obj_emb], axis=-1)   # (B, 3*F0)

    # ----- trace-time folding (constant-folded by XLA; zero in-kernel cost) ---
    # Valid because the eval-mode forward is purely linear after propagation:
    #   logits = sum_n x[:,n,:]      @ (W0/3 @ Wcg[n])
    #          + sum_n (A x)[:,n,:]  @ (W1/3 @ Wcg[n])
    #          + sum_n (A^2 x)[:,n,:]@ (W2/3 @ Wcg[n])
    #          + nin @ (Wn @ Wcn)
    #          + [bg @ sum_n Wcg[n] + bn @ Wcn + bc]
    # (breaks if dropout is active, an activation is added, or the
    #  SelfAttention branch is enabled.)
    third = jnp.float32(1.0 / 3.0)
    Wcn = params["Wc"][:Fn]                          # (Fn, L)  rows on normal emb
    Wcg = params["Wc"][Fn:].reshape(N, F1, L)        # (N, F1, L) node-major rows
    Wfx = jnp.einsum("fk,nkl->nfl", params["W0"] * third, Wcg).reshape(N * F0, L)
    Wfax = jnp.einsum("fk,nkl->nfl", params["W1"] * third, Wcg).reshape(N * F0, L)
    Wfaax = jnp.einsum("fk,nkl->nfl", params["W2"] * third, Wcg).reshape(N * F0, L)
    Wnorm = params["Wn"] @ Wcn                       # (3*F0, L)
    bg = (params["b0"] + params["b1"] + params["b2"]) * third          # (1, F1)
    bias = bg @ jnp.sum(Wcg, axis=0) + params["bn"] @ Wcn + params["bc"]  # (1, L)

    # Lane-dense output: zero-pad the label dim up to 128 so the kernel's
    # logits store is a full-lane (unmasked) store; slice back afterwards.
    pad = Lp - L
    Wfx, Wfax, Wfaax, Wnorm, bias = (
        jnp.pad(w, ((0, 0), (0, pad))) for w in (Wfx, Wfax, Wfaax, Wnorm, bias))

    logits_padded = run_fused(input_embeddings, link_matrix, normal_input,
                              Wfx, Wfax, Wfaax, Wnorm, bias)
    return logits_padded[:, :L]


# ---------------------------------------------------------------------------
# Pure-JAX reference (mirrors the PyTorch forward, eval mode)
# ---------------------------------------------------------------------------
def gcn_forward_ref(input_embeddings, link_matrix, cls_emb, sub_emb, obj_emb, params):
    B, N, _ = input_embeddings.shape
    x = input_embeddings
    a = link_matrix
    ax = jnp.einsum("bij,bjf->bif", a, x)
    aax = jnp.einsum("bij,bjf->bif", a, ax)
    h0 = x @ params["W0"] + params["b0"]
    h1 = ax @ params["W1"] + params["b1"]
    h2 = aax @ params["W2"] + params["b2"]
    gcn = (h0 + h1 + h2) / 3.0
    gcn_embedding = gcn.reshape(B, -1)
    normal_input = jnp.concatenate([cls_emb, sub_emb, obj_emb], axis=-1)
    normal_out = normal_input @ params["Wn"] + params["bn"]
    all_embedding = jnp.concatenate([normal_out, gcn_embedding], axis=-1)
    return all_embedding @ params["Wc"] + params["bc"]


if __name__ == "__main__":
    B, N, F0, F1, Fn, L = 2, 8, 32, 16, 32, 5   # batch, node_count, feature dims, label_count

    key = jax.random.PRNGKey(0)
    ks = jax.random.split(key, 16)

    input_embeddings = jax.random.normal(ks[0], (B, N, F0), jnp.float32)
    # symmetric-ish binary link matrix (like the repeated link_matrix_*)
    adj = (jax.random.uniform(ks[1], (N, N)) > 0.6).astype(jnp.float32)
    adj = jnp.maximum(adj, adj.T) + jnp.eye(N, dtype=jnp.float32)
    link_matrix = jnp.broadcast_to(adj, (B, N, N))
    cls_emb = jax.random.normal(ks[2], (B, F0), jnp.float32)
    sub_emb = jax.random.normal(ks[3], (B, F0), jnp.float32)
    obj_emb = jax.random.normal(ks[4], (B, F0), jnp.float32)

    sc = 0.1
    params = {
        "W0": sc * jax.random.normal(ks[5], (F0, F1), jnp.float32),
        "b0": sc * jax.random.normal(ks[6], (1, F1), jnp.float32),
        "W1": sc * jax.random.normal(ks[7], (F0, F1), jnp.float32),
        "b1": sc * jax.random.normal(ks[8], (1, F1), jnp.float32),
        "W2": sc * jax.random.normal(ks[9], (F0, F1), jnp.float32),
        "b2": sc * jax.random.normal(ks[10], (1, F1), jnp.float32),
        "Wn": sc * jax.random.normal(ks[11], (3 * F0, Fn), jnp.float32),
        "bn": sc * jax.random.normal(ks[12], (1, Fn), jnp.float32),
        "Wc": sc * jax.random.normal(ks[13], (Fn + N * F1, L), jnp.float32),
        "bc": sc * jax.random.normal(ks[14], (1, L), jnp.float32),
    }

    logits = gcn_forward(input_embeddings, link_matrix, cls_emb, sub_emb, obj_emb, params)
    logits = jax.block_until_ready(logits)

    ref = gcn_forward_ref(input_embeddings, link_matrix, cls_emb, sub_emb, obj_emb, params)
    np.testing.assert_allclose(np.asarray(logits), np.asarray(ref), atol=5e-4, rtol=5e-4)

    print("KERNEL_OK")
</pallas_src>

<mosaic_0001>
module attributes {stable_mosaic.version = 11 : i64} {
  func.func @fused_gcn_kernel(%arg0: memref<2x8x32xf32, #tpu.memory_space<vmem>>, %arg1: memref<2x8x8xf32, #tpu.memory_space<vmem>>, %arg2: memref<2x96xf32, #tpu.memory_space<vmem>>, %arg3: memref<256x128xf32, #tpu.memory_space<vmem>>, %arg4: memref<256x128xf32, #tpu.memory_space<vmem>>, %arg5: memref<256x128xf32, #tpu.memory_space<vmem>>, %arg6: memref<96x128xf32, #tpu.memory_space<vmem>>, %arg7: memref<1x128xf32, #tpu.memory_space<vmem>>, %arg8: memref<2x128xf32, #tpu.memory_space<vmem>>) attributes {dimension_semantics = [], scalar_prefetch = 0 : i64, scratch_operands = 0 : i64, tpu.core_type = #tpu.core_type<tc>} {
    %c0 = arith.constant 0 : index
    %c0_0 = arith.constant 0 : index
    %c0_1 = arith.constant 0 : index
    %0 = vector.load %arg0[%c0, %c0_0, %c0_1] : memref<2x8x32xf32, #tpu.memory_space<vmem>>, vector<2x8x32xf32>
    %c0_2 = arith.constant 0 : index
    %c0_3 = arith.constant 0 : index
    %c0_4 = arith.constant 0 : index
    %1 = vector.load %arg1[%c0_2, %c0_3, %c0_4] : memref<2x8x8xf32, #tpu.memory_space<vmem>>, vector<2x8x8xf32>
    "tpu.trace_start"() <{level = 10 : i32, message = "bij,bjf->bif"}> : () -> ()
    %cst = arith.constant dense<0.000000e+00> : vector<2x8x32xf32>
    %2 = tpu.matmul %1, %0, %cst {dimension_numbers = #tpu.dot_dimension_numbers<[2], [1], [1], [2], [0, 0, 0, 1, 1, 2], [0], [0]>} : vector<2x8x8xf32>, vector<2x8x32xf32>, vector<2x8x32xf32> -> vector<2x8x32xf32>
    "tpu.trace_stop"() : () -> ()
    "tpu.trace_start"() <{level = 10 : i32, message = "bij,bjk->bik"}> : () -> ()
    %cst_5 = arith.constant dense<0.000000e+00> : vector<2x8x8xf32>
    %3 = tpu.matmul %1, %1, %cst_5 {dimension_numbers = #tpu.dot_dimension_numbers<[2], [1], [1], [2], [0, 0, 0, 1, 1, 2], [0], [0]>} : vector<2x8x8xf32>, vector<2x8x8xf32>, vector<2x8x8xf32> -> vector<2x8x8xf32>
    "tpu.trace_stop"() : () -> ()
    "tpu.trace_start"() <{level = 10 : i32, message = "bij,bjf->bif"}> : () -> ()
    %cst_6 = arith.constant dense<0.000000e+00> : vector<2x8x32xf32>
    %4 = tpu.matmul %3, %0, %cst_6 {dimension_numbers = #tpu.dot_dimension_numbers<[2], [1], [1], [2], [0, 0, 0, 1, 1, 2], [0], [0]>} : vector<2x8x8xf32>, vector<2x8x32xf32>, vector<2x8x32xf32> -> vector<2x8x32xf32>
    "tpu.trace_stop"() : () -> ()
    %5 = vector.shape_cast %0 : vector<2x8x32xf32> to vector<2x256xf32>
    %6 = vector.shape_cast %2 : vector<2x8x32xf32> to vector<2x256xf32>
    %7 = vector.shape_cast %4 : vector<2x8x32xf32> to vector<2x256xf32>
    %c0_7 = arith.constant 0 : index
    %c0_8 = arith.constant 0 : index
    %8 = vector.load %arg3[%c0_7, %c0_8] : memref<256x128xf32, #tpu.memory_space<vmem>>, vector<256x128xf32>
    %cst_9 = arith.constant dense<0.000000e+00> : vector<2x128xf32>
    %9 = tpu.matmul %5, %8, %cst_9 {dimension_numbers = #tpu.dot_dimension_numbers<[1], [0], [0], [1], [0, 0, 1, 1], [], []>} : vector<2x256xf32>, vector<256x128xf32>, vector<2x128xf32> -> vector<2x128xf32>
    %c0_10 = arith.constant 0 : index
    %c0_11 = arith.constant 0 : index
    %10 = vector.load %arg4[%c0_10, %c0_11] : memref<256x128xf32, #tpu.memory_space<vmem>>, vector<256x128xf32>
    %cst_12 = arith.constant dense<0.000000e+00> : vector<2x128xf32>
    %11 = tpu.matmul %6, %10, %cst_12 {dimension_numbers = #tpu.dot_dimension_numbers<[1], [0], [0], [1], [0, 0, 1, 1], [], []>} : vector<2x256xf32>, vector<256x128xf32>, vector<2x128xf32> -> vector<2x128xf32>
    %12 = arith.addf %9, %11 : vector<2x128xf32>
    %c0_13 = arith.constant 0 : index
    %c0_14 = arith.constant 0 : index
    %13 = vector.load %arg5[%c0_13, %c0_14] : memref<256x128xf32, #tpu.memory_space<vmem>>, vector<256x128xf32>
    %cst_15 = arith.constant dense<0.000000e+00> : vector<2x128xf32>
    %14 = tpu.matmul %7, %13, %cst_15 {dimension_numbers = #tpu.dot_dimension_numbers<[1], [0], [0], [1], [0, 0, 1, 1], [], []>} : vector<2x256xf32>, vector<256x128xf32>, vector<2x128xf32> -> vector<2x128xf32>
    %15 = arith.addf %12, %14 : vector<2x128xf32>
    %c0_16 = arith.constant 0 : index
    %c0_17 = arith.constant 0 : index
    %16 = vector.load %arg2[%c0_16, %c0_17] : memref<2x96xf32, #tpu.memory_space<vmem>>, vector<2x96xf32>
    %c0_18 = arith.constant 0 : index
    %c0_19 = arith.constant 0 : index
    %17 = vector.load %arg6[%c0_18, %c0_19] : memref<96x128xf32, #tpu.memory_space<vmem>>, vector<96x128xf32>
    %cst_20 = arith.constant dense<0.000000e+00> : vector<2x128xf32>
    %18 = tpu.matmul %16, %17, %cst_20 {dimension_numbers = #tpu.dot_dimension_numbers<[1], [0], [0], [1], [0, 0, 1, 1], [], []>} : vector<2x96xf32>, vector<96x128xf32>, vector<2x128xf32> -> vector<2x128xf32>
    %19 = arith.addf %15, %18 : vector<2x128xf32>
    %c0_21 = arith.constant 0 : index
    %c0_22 = arith.constant 0 : index
    %20 = vector.load %arg7[%c0_21, %c0_22] : memref<1x128xf32, #tpu.memory_space<vmem>>, vector<1x128xf32>
    %21 = vector.broadcast %20 : vector<1x128xf32> to vector<2x128xf32>
    %22 = arith.addf %19, %21 : vector<2x128xf32>
    %c0_23 = arith.constant 0 : index
    %c0_24 = arith.constant 0 : index
    %23 = vector.load %arg8[%c0_23, %c0_24] : memref<2x128xf32, #tpu.memory_space<vmem>>, vector<2x128xf32>
    tpu.vector_store %arg8[%c0_23, %c0_24], %22 {strides = array<i32>} : memref<2x128xf32, #tpu.memory_space<vmem>>, vector<2x128xf32>,
    return
  }
}

</mosaic_0001>

<bundles_post_ra>
// kernel: tpu_custom_call.1
= control target key start
LH: loop header
LB: loop body
LE: loop exit
PB: predicated region body
PF: predicated region fallthrough
CT: control target
= control target key end

     0   :  { %13 = vsyncpa [#allocation3], 0  ;;  %s1918_s0 = inlined_call_operand.hbm [shape: f32[2,8,32], index: 0, kind: input, shape index: {}]   ;;  %s1919_s1 = inlined_call_operand.hbm [shape: f32[2,8,8], index: 1, kind: input, shape index: {}]   ;;  %s1920_s2 = inlined_call_operand.vmem [shape: f32[2,96], index: 2, kind: input, shape index: {}]   ;;  %s1921_s3 = inlined_call_operand.hbm [shape: f32[256,128], index: 3, kind: input, shape index: {}]   ;;  %s1922_s4 = inlined_call_operand.hbm [shape: f32[256,128], index: 4, kind: input, shape index: {}]   ;;  %s1923_s5 = inlined_call_operand.hbm [shape: f32[256,128], index: 5, kind: input, shape index: {}]   ;;  %s1924_s6 = inlined_call_operand.hbm [shape: f32[96,128], index: 6, kind: input, shape index: {}]   ;;  %s1925_s7 = inlined_call_operand.vmem [shape: f32[1,128], index: 7, kind: input, shape index: {}]   ;;  %s1926_s8 = inlined_call_operand.hbm [shape: f32[2,128], index: 8, kind: output, shape index: {}]  }
   0x1   :  { %14 = vsyncpa [#allocation6], 0 }
   0x2   :  { %15 = vsyncpa [#allocation9], 0 }
   0x3   :  { %16 = vsyncpa [#allocation12], 0 }
   0x4   :  { %17 = vsyncpa [#allocation4], 0  ;;  %s1671_s27 = smov [#allocation5]   ;;  %s1672_s29 = smov [#allocation8]  }
   0x5   :  { %s35_s28 = sshll.u32 %s1671_s27, 4  ;;  %s61_s30 = sshll.u32 %s1672_s29, 4  ;;  %s36_s28 = int_to_ptr.vmem [resolvable:$true] %s35_s28  ;;  %s62_s30 = int_to_ptr.vmem [resolvable:$true] %s61_s30 }
   0x6   :  { %s1529_s9 = scalar_lea.vmem %s36_s28, 256  ;;  %p1534_p1 = scmp.lt.s32.totalorder %s36_s28, %s36_s28 }
   0x7   :  { %p1530_p0 = scmp.ne.s32.totalorder %s36_s28, %s1529_s9  ;;  %p1535_p2 = scmp.lt.s32.totalorder %s1529_s9, %s1529_s9 }
   0x9   :  { %p1536_p3 = por %p1535_p2, %p1534_p1 }
   0xb   :  { %p1537_p4 = pnand %p1536_p3, %p1530_p0 }
   0xd   :  { %1540 = shalt.err (!%p1537_p4)
}
   0xe   :  { %s1673_s10 = smov 128   ;;  %s1674_s11 = smov 8  }
   0xf   :  { %41 = dma.hbm_to_vmem [thread:$0]  %s1919_s1, 256, %s36_s28, [#allocation6], %s1673_s10, %s1673_s10, %s1674_s11  }
  0x10   :  { %s1549_s14 = scalar_lea.vmem %s62_s30, 4096  ;;  %p1554_p6 = scmp.lt.s32.totalorder %s62_s30, %s62_s30 }
  0x11   :  { %p1550_p5 = scmp.ne.s32.totalorder %s62_s30, %s1549_s14  ;;  %p1555_p7 = scmp.lt.s32.totalorder %s1549_s14, %s1549_s14 }
  0x13   :  { %p1556_p8 = por %p1555_p7, %p1554_p6 }
  0x15   :  { %p1557_p9 = pnand %p1556_p8, %p1550_p5 }
  0x17   :  { %1560 = shalt.err (!%p1557_p9)
}
  0x18   :  { %67 = dma.hbm_to_vmem [thread:$0]  %s1922_s4, 4096, %s62_s30, [#allocation9], %s1673_s10, %s1673_s10, %s1674_s11  }
  0x19   :  { %s1675_s17 = smov [#allocation2]   ;;  %s1676_s19 = smov [#allocation7]  }
  0x1a   :  { %s23_s18 = sshll.u32 %s1675_s17, 4  ;;  %s49_s20 = sshll.u32 %s1676_s19, 4  ;;  %s24_s18 = int_to_ptr.vmem [resolvable:$true] %s23_s18  ;;  %s50_s20 = int_to_ptr.vmem [resolvable:$true] %s49_s20 }
  0x1b   :  { %s1569_s1 = scalar_lea.vmem %s24_s18, 256  ;;  %p1574_p11 = scmp.lt.s32.totalorder %s24_s18, %s24_s18 }
  0x1c   :  { %p1570_p10 = scmp.ne.s32.totalorder %s24_s18, %s1569_s1  ;;  %p1575_p12 = scmp.lt.s32.totalorder %s1569_s1, %s1569_s1 }
  0x1e   :  { %p1576_p13 = por %p1575_p12, %p1574_p11 }
  0x20   :  { %p1577_p0 = pnand %p1576_p13, %p1570_p10 }
  0x22   :  { %1580 = shalt.err (!%p1577_p0)
}
  0x23   :  { %29 = dma.hbm_to_vmem [thread:$0]  %s1918_s0, 256, %s24_s18, [#allocation3], %s1673_s10, %s1673_s10, %s1674_s11  }
  0x24   :  { %s1589_s4 = scalar_lea.vmem %s50_s20, 4096  ;;  %p1594_p2 = scmp.lt.s32.totalorder %s50_s20, %s50_s20 }
  0x25   :  { %p1590_p1 = scmp.ne.s32.totalorder %s50_s20, %s1589_s4  ;;  %p1595_p3 = scmp.lt.s32.totalorder %s1589_s4, %s1589_s4 }
  0x27   :  { %p1596_p4 = por %p1595_p3, %p1594_p2 }
  0x29   :  { %p1597_p5 = pnand %p1596_p4, %p1590_p1 }
  0x2b   :  { %1600 = shalt.err (!%p1597_p5)
}
  0x2c   :  { %55 = dma.hbm_to_vmem [thread:$0]  %s1921_s3, 4096, %s50_s20, [#allocation6], %s1673_s10, %s1673_s10, %s1674_s11  }
  0x2d   :  { %s1677_s25 = smov [#allocation10]   ;;  %s1678_s27 = smov [#allocation11]  }
  0x2e   :  { %s73_s26 = sshll.u32 %s1677_s25, 4  ;;  %s85_s28 = sshll.u32 %s1678_s27, 4  ;;  %s74_s26 = int_to_ptr.vmem [resolvable:$true] %s73_s26  ;;  %s86_s28 = int_to_ptr.vmem [resolvable:$true] %s85_s28 }
  0x2f   :  { %s1609_s0 = scalar_lea.vmem %s74_s26, 4096  ;;  %p1614_p7 = scmp.lt.s32.totalorder %s74_s26, %s74_s26 }
  0x30   :  { %p1610_p6 = scmp.ne.s32.totalorder %s74_s26, %s1609_s0  ;;  %p1615_p8 = scmp.lt.s32.totalorder %s1609_s0, %s1609_s0 }
  0x32   :  { %p1616_p9 = por %p1615_p8, %p1614_p7 }
  0x34   :  { %p1617_p10 = pnand %p1616_p9, %p1610_p6 }
  0x36   :  { %1620 = shalt.err (!%p1617_p10)
}
  0x37   :  { %79 = dma.hbm_to_vmem [thread:$0]  %s1923_s5, 4096, %s74_s26, [#allocation9], %s1673_s10, %s1673_s10, %s1674_s11  }
  0x38   :  { %s1629_s3 = scalar_lea.vmem %s86_s28, 1536  ;;  %p1634_p12 = scmp.lt.s32.totalorder %s86_s28, %s86_s28 }
  0x39   :  { %p1630_p11 = scmp.ne.s32.totalorder %s86_s28, %s1629_s3  ;;  %p1635_p13 = scmp.lt.s32.totalorder %s1629_s3, %s1629_s3 }
  0x3b   :  { %p1636_p0 = por %p1635_p13, %p1634_p12 }
  0x3d   :  { %p1637_p1 = pnand %p1636_p0, %p1630_p11 }
  0x3f   :  { %1640 = shalt.err (!%p1637_p1)
}
  0x40   :  { %91 = dma.hbm_to_vmem [thread:$0]  %s1924_s6, 1536, %s86_s28, [#allocation12], %s1673_s10, %s1673_s10, %s1674_s11  }
  0x41   :  { %1661 = dma.done.wait [#allocation3], 256  }
  0x42   :  { %1662 = vsyncadd [#allocation3], 4294967040 }
  0x43   :  { %1663 = dma.done.wait [#allocation6], 4352  }
  0x44   :  { %1664 = vsyncadd [#allocation6], 4294962944 }
  0x45   :  { %1665 = dma.done.wait [#allocation9], 8192  }
  0x46   :  { %1666 = vsyncadd [#allocation9], 4294959104 }
  0x47   :  { %1667 = dma.done.wait [#allocation12], 1536  }
  0x48   :  { %1668 = vsyncadd [#allocation12], 4294965760  ;;  %v561_v0 = vlaneseq  ;;  %v1679_v1 = vmov 0.0   ;;  %v1680_v2 = vmov 1983009808   ;;  %vm1681_vm0 = vmmov 0  }
  0x49   :  { %1403 = vmatprep.subr.mxu1 %v1679_v1  ;;  %v559_v3 = vunpack.c.l.s4 %v1680_v2  ;;  %1405 = vmatprep.mubr.msk.f32.mxu1 %vm1681_vm0, %v1679_v1  ;;  %vm116_vm1 = vcmask 64512   ;;  %v112_v6 = vld [vmem:[#allocation2] sm:$0xff]  ;;  %v114_v7 = vld [vmem:[#allocation5] sm:$0xff]  ;;  %v113_v8 = vld [vmem:[#allocation2 + $0x8] sm:$0xff]  ;;  %v1682_v19 = vmov 1934713408  }
  0x4a   :  { %1413 = vmatprep.subr.mxu0 %v1679_v1  ;;  %1415 = vmatprep.mubr.msk.f32.mxu0 %vm1681_vm0, %v1679_v1  ;;  %v562_v5 = vshrl.u32 %v561_v0, 7  ;;  %v550_v9 = vcombine.high %v112_v6, %v1679_v1  ;;  %v566_v11 = vcombine.high %v113_v8, %v1679_v1  ;;  %v115_v14 = vld [vmem:[#allocation5 + $0x8] sm:$0xff]  ;;  %v584_v20 = vunpack.c.l.s4 %v1682_v19  ;;  %v1269_v21 = vld.sshfl [vmem:[#allocation2] sm:$0xff pattern:$0x76325410]  ;;  %v904_v29 = vld [vmem:[#allocation8 + $0xf0] sm:$0xff] }
  0x4b   :  { %v560_v4 = vunpack.c.0.s8 %v559_v3  ;;  %1404 = vmatpush3.msra.mxu1 %v112_v6  ;;  %1414 = vmatpush3.msra.mxu0 %v114_v7  ;;  %v905_v17 = vld [vmem:[#allocation8 + $0xf8] sm:$0xff]  ;;  %v1270_v22 = vld.sshfl [vmem:[#allocation2 + $0x8] sm:$0xff pattern:$0x76325410]  ;;  %v888_v31 = vld [vmem:[#allocation8 + $0x70] sm:$0xff]  ;;  %s1683_s5 = smov 96  }
  0x4c   :  { %1406 = vmatmul.mubr.msk.f32.vlgmr.msra.gmra.mxu1 %vm116_vm1, %v114_v7  ;;  %1408 = vmatprep.subr.mxu1 %v1679_v1  ;;  %v873_v18 = vld [vmem:[#allocation7 + $0xf8] sm:$0xff]  ;;  %v585_v23 = vunpack.c.0.s8 %v584_v20  ;;  %v581_v28 = vcombine.low %v1269_v21, %v1270_v22  ;;  %v903_v35 = vld [vmem:[#allocation8 + $0xe8] sm:$0xff]  ;;  %v902_v48 = vld [vmem:[#allocation8 + $0xe0] sm:$0xff]  ;;  %v582_v50 = vcombine.high %v1269_v21, %v1270_v22  ;;  %s1684_s6 = smov 32   ;;  %s1685_s10 = smov 64   ;;  %vm641_vm2 = vcmask 261120  }
  0x4d   :  { %v1775_v10 = vsub.s32 %v560_v4, %v562_v5  ;;  %1409 = vmatpush3.msra.mxu1 %v113_v8  ;;  %1410 = vmatprep.mubr.msk.f32.mxu1 %vm1681_vm0, %v1679_v1  ;;  %v889_v25 = vld [vmem:[#allocation8 + $0x78] sm:$0xff]  ;;  %v887_v39 = vld [vmem:[#allocation8 + $0x68] sm:$0xff]  ;;  %v872_v51 = vld [vmem:[#allocation7 + $0xf0] sm:$0xff]  ;;  %vm643_vm3 = vcmask 523264   ;;  %vm645_vm4 = vcmask 785408   ;;  %s1686_s15 = smov [#allocation13]  }
  0x4e   :  { %1418 = vmatprep.subr.mxu1 %v1679_v1  ;;  %1416 = vmatmul.mubr.msk.f32.vlgmr.msra.gmra.mxu0 %vm116_vm1, %v114_v7  ;;  %v1806_v32 = vsub.s32 %v585_v23, %v562_v5  ;;  %v857_v47 = vld [vmem:[#allocation7 + $0x78] sm:$0xff]  ;;  %v886_v56 = vld [vmem:[#allocation8 + $0x60] sm:$0xff]  ;;  %v856_v57 = vld [vmem:[#allocation7 + $0x70] sm:$0xff]  ;;  %s1251_s16 = sshll.u32 %s1686_s15, 4  ;;  %s1252_s16 = int_to_ptr.vmem [resolvable:$true] %s1251_s16 }
  0x4f   :  { %v1781_v12 = vrot.slane %v550_v9, %v1775_v10  ;;  %v1784_v13 = vrot.slane %v566_v11, %v1775_v10  ;;  %1423 = vmatprep.subr.mxu0 %v1679_v1  ;;  %1425 = vmatprep.mubr.msk.f32.mxu0 %vm1681_vm0, %v1679_v1  ;;  %v901_v59 = vld [vmem:[#allocation8 + $0xd8] sm:$0xff]  ;;  %v871_v60 = vld [vmem:[#allocation7 + $0xe8] sm:$0xff]  ;;  %v900_v7 = vld [vmem:[#allocation8 + $0xd0] sm:$0xff]  ;;  %s1641_s17 = scalar_lea.vmem %s1252_s16, 32  ;;  %p1646_p3 = scmp.lt.s32.totalorder %s1252_s16, %s1252_s16 }
  0x50   :  { %1411 = vmatmul.mubr.msk.f32.vlgmr.msra.gmra.mxu1 %vm116_vm1, %v115_v14  ;;  %1424 = vmatpush3.msra.mxu0 %v112_v6  ;;  %v1812_v41 = vrot.slane %v581_v28, %v1806_v32  ;;  %v885_v2 = vld [vmem:[#allocation8 + $0x58] sm:$0xff]  ;;  %v855_v3 = vld [vmem:[#allocation7 + $0x68] sm:$0xff]  ;;  %v596_v5 = vrot.slane %v582_v50, %v1806_v32  ;;  %v852_v28 = vld [vmem:[#allocation7 + $0x50] sm:$0xff]  ;;  %p1642_p2 = scmp.ne.s32.totalorder %s1252_s16, %s1641_s17  ;;  %p1647_p4 = scmp.lt.s32.totalorder %s1641_s17, %s1641_s17 }
  0x51   :  { %v597_v15 = vcombine.low %v1781_v12, %v1784_v13  ;;  %1419 = vmatpush3.msra.mxu1 %v115_v14  ;;  %1420 = vmatprep.mubr.msk.f32.mxu1 %vm1681_vm0, %v1679_v1  ;;  %v598_v16 = vcombine.high %v1781_v12, %v1784_v13  ;;  %v883_v19 = vld [vmem:[#allocation8 + $0x48] sm:$0xff]  ;;  %v853_v20 = vld [vmem:[#allocation7 + $0x58] sm:$0xff] }
  0x52   :  { %1428 = vmatprep.subr.mxu1 %v1679_v1  ;;  %1285 = vmatprep.subr.mxu0 %v905_v17  ;;  %v613_v63 = vcombine.high %v1812_v41, %v1679_v1  ;;  %v854_v17 = vld [vmem:[#allocation7 + $0x60] sm:$0xff]  ;;  %v614_v22 = vcombine.high %v596_v5, %v1679_v1  ;;  %v893_v50 = vld [vmem:[#allocation8 + $0x98] sm:$0xff]  ;;  %p1648_p5 = por %p1647_p4, %p1646_p3 }
  0x53   :  { %v1815_v42 = vrot.slane %v597_v15, %v1806_v32  ;;  %v612_v6 = vrot.slane %v598_v16, %v1806_v32  ;;  %v884_v15 = vld [vmem:[#allocation8 + $0x50] sm:$0xff]  ;;  %v899_v16 = vld [vmem:[#allocation8 + $0xc8] sm:$0xff] }
  0x54   :  { %1421 = vmatmul.mubr.msk.f32.vlgmr.msra.gmra.mxu1 %vm116_vm1, %v115_v14  ;;  %p1649_p6 = pnand %p1648_p5, %p1642_p2 }
  0x55   :  { %1429 = vmatpush3.msra.mxu1 %v113_v8  ;;  %1430 = vmatprep.mubr.msk.f32.mxu1 %vm1681_vm0, %v1679_v1  ;;  %v615_v0 = vcombine.high %v1815_v42, %v1679_v1  ;;  %v870_v8 = vld [vmem:[#allocation7 + $0xe0] sm:$0xff]  ;;  %v616_v23 = vcombine.high %v612_v6, %v1679_v1 }
  0x56   :  { %1320 = vmatprep.subr.mxu1 %v873_v18  ;;  %v869_v18 = vld [vmem:[#allocation7 + $0xd8] sm:$0xff] }
  0x57   :  { %v1491_v21 = vpack.i.bf16 %v613_v63, %v615_v0  ;;  %v845_v63 = vld [vmem:[#allocation7 + $0x18] sm:$0xff]  ;;  %v890_v0 = vld [vmem:[#allocation8 + $0x80] sm:$0xff] }
 0x10c   :  { %v186_v24 = vpop.f32.mrf.mxu1 }
 0x10d   :  { %v650_v30 = vcombine.high %v186_v24, %v1679_v1  ;;  %v657_v36 = vrot.slane %v186_v24, %v1775_v10  ;;  %v898_v24 = vld [vmem:[#allocation8 + $0xc0] sm:$0xff] }
 0x10e   :  { %v1407_v26 = vpop.f32.mrf.mxu1  ;;  %v329_v27 = vpop.f32.mrf.mxu0 }
 0x10f   :  { %1426 = vmatmul.mubr.msk.f32.vlgmr.msra.gmra.mxu0 %vm116_vm1, %v329_v27  ;;  %v664_v43 = vrot.slane %v650_v30, %v1775_v10  ;;  %v882_v27 = vld [vmem:[#allocation8 + $0x40] sm:$0xff]  ;;  %v867_v30 = vld [vmem:[#allocation7 + $0xc8] sm:$0xff] }
 0x110   :  { %v259_v33 = vpop.f32.mrf.mxu1  ;;  %v1417_v34 = vpop.f32.mrf.mxu0  ;;  %1286 = vmatpush3.msra.mxu0 %v889_v25  ;;  %v868_v25 = vld [vmem:[#allocation7 + $0xd0] sm:$0xff] }
 0x111   :  { %v665_v37 = vcombine.high %v259_v33, %v1679_v1  ;;  %v672_v38 = vrot.slane %v259_v33, %v1775_v10  ;;  %1287 = vmatprep.subr.mxu0 %v904_v29  ;;  %v897_v29 = vld [vmem:[#allocation8 + $0xb8] sm:$0xff]  ;;  %v1501_v33 = vpack.i.bf16 %v614_v22, %v616_v23 }
 0x112   :  { %v1412_v40 = vpop.f32.mrf.mxu1  ;;  %1288 = vmatpush3.msra.mxu0 %v888_v31  ;;  %v1496_v31 = vpack.i.bf16 %v596_v5, %v612_v6  ;;  %v881_v34 = vld [vmem:[#allocation8 + $0x38] sm:$0xff]  ;;  %v859_v5 = vld [vmem:[#allocation7 + $0x88] sm:$0xff] }
 0x113   :  { %v679_v44 = vrot.slane %v665_v37, %v1775_v10  ;;  %v680_v45 = vcombine.low %v657_v36, %v672_v38  ;;  %v681_v46 = vcombine.high %v657_v36, %v672_v38  ;;  %1289 = vmatprep.subr.mxu0 %v903_v35  ;;  %v851_v35 = vld [vmem:[#allocation7 + $0x48] sm:$0xff]  ;;  %v896_v36 = vld [vmem:[#allocation8 + $0xb0] sm:$0xff]  ;;  %v866_v37 = vld [vmem:[#allocation7 + $0xc0] sm:$0xff] }
 0x114   :  { %v399_v49 = vpop.f32.mrf.mxu1  ;;  %1290 = vmatpush3.msra.mxu0 %v887_v39  ;;  %v880_v38 = vld [vmem:[#allocation8 + $0x30] sm:$0xff]  ;;  %v850_v39 = vld [vmem:[#allocation7 + $0x40] sm:$0xff]  ;;  %v895_v40 = vld [vmem:[#allocation8 + $0xa8] sm:$0xff] }
 0x115   :  { %v696_v52 = vcombine.low %v664_v43, %v679_v44  ;;  %v697_v53 = vcombine.high %v664_v43, %v679_v44  ;;  %1431 = vmatmul.mubr.msk.f32.vlgmr.msra.gmra.mxu1 %vm116_vm1, %v399_v49  ;;  %v1821_v54 = vrot.slane %v681_v46, %v1806_v32  ;;  %v1824_v55 = vrot.slane %v680_v45, %v1806_v32  ;;  %v865_v43 = vld [vmem:[#allocation7 + $0xb8] sm:$0xff]  ;;  %v879_v44 = vld [vmem:[#allocation8 + $0x28] sm:$0xff]  ;;  %v894_v46 = vld [vmem:[#allocation8 + $0xa0] sm:$0xff] }
 0x116   :  { %v1422_v58 = vpop.f32.mrf.mxu1  ;;  %1321 = vmatpush3.msra.mxu1 %v857_v47  ;;  %1291 = vmatprep.subr.mxu0 %v902_v48  ;;  %v849_v45 = vld [vmem:[#allocation7 + $0x38] sm:$0xff]  ;;  %v864_v47 = vld [vmem:[#allocation7 + $0xb0] sm:$0xff]  ;;  %v878_v48 = vld [vmem:[#allocation8 + $0x20] sm:$0xff] }
 0x117   :  { %v711_v61 = vrot.slane %v697_v53, %v1806_v32  ;;  %v1828_v62 = vrot.slane %v696_v52, %v1806_v32  ;;  %1322 = vmatprep.subr.mxu1 %v872_v51  ;;  %v713_v4 = vcombine.high %v1821_v54, %v1679_v1  ;;  %1292 = vmatpush3.msra.mxu0 %v886_v56  ;;  %v848_v49 = vld [vmem:[#allocation7 + $0x30] sm:$0xff]  ;;  %v863_v51 = vld [vmem:[#allocation7 + $0xa8] sm:$0xff]  ;;  %v877_v52 = vld [vmem:[#allocation8 + $0x18] sm:$0xff] }
 0x118   :  { %1323 = vmatpush3.msra.mxu1 %v856_v57  ;;  %v712_v11 = vcombine.high %v1824_v55, %v1679_v1  ;;  %1293 = vmatprep.subr.mxu0 %v901_v59  ;;  %v847_v53 = vld [vmem:[#allocation7 + $0x28] sm:$0xff]  ;;  %v862_v56 = vld [vmem:[#allocation7 + $0xa0] sm:$0xff]  ;;  %v876_v57 = vld [vmem:[#allocation8 + $0x10] sm:$0xff] }
 0x119   :  { %v715_v9 = vcombine.high %v711_v61, %v1679_v1  ;;  %v714_v14 = vcombine.high %v1828_v62, %v1679_v1  ;;  %1324 = vmatprep.subr.mxu1 %v871_v60  ;;  %1294 = vmatpush3.msra.mxu0 %v885_v2  ;;  %v1481_v26 = vpack.i.bf16 %v1821_v54, %v711_v61  ;;  %v892_v54 = vld [vmem:[#allocation8 + $0x90] sm:$0xff]  ;;  %v846_v58 = vld [vmem:[#allocation7 + $0x20] sm:$0xff]  ;;  %v891_v59 = vld [vmem:[#allocation8 + $0x88] sm:$0xff] }
 0x11a   :  { %1325 = vmatpush3.msra.mxu1 %v855_v3  ;;  %1295 = vmatprep.subr.mxu0 %v900_v7  ;;  %v861_v60 = vld [vmem:[#allocation7 + $0x98] sm:$0xff]  ;;  %v875_v61 = vld [vmem:[#allocation8 + $0x8] sm:$0xff]  ;;  %v860_v2 = vld [vmem:[#allocation7 + $0x90] sm:$0xff] }
 0x11b   :  { %v1486_v12 = vpack.i.bf16 %v713_v4, %v715_v9  ;;  %v1476_v13 = vpack.i.bf16 %v712_v11, %v714_v14  ;;  %1326 = vmatprep.subr.mxu1 %v870_v8  ;;  %1296 = vmatpush3.msra.mxu0 %v884_v15  ;;  %v874_v3 = vld [vmem:[#allocation8] sm:$0xff]  ;;  %v844_v4 = vld [vmem:[#allocation7 + $0x10] sm:$0xff]  ;;  %v843_v6 = vld [vmem:[#allocation7 + $0x8] sm:$0xff] }
 0x11c   :  { %1327 = vmatpush3.msra.mxu1 %v854_v17  ;;  %1297 = vmatprep.subr.mxu0 %v899_v16  ;;  %v858_v7 = vld [vmem:[#allocation7 + $0x80] sm:$0xff]  ;;  %v1077_v9 = vld [vmem:[#allocation10 + $0xf8] sm:$0xff] }
 0x11d   :  { %1487 = vrot.lane.b32.xlu1 %v1486_v12, %s1683_s5  ;;  %1477 = vrot.lane.b32.xlu0 %v1476_v13, %s1684_s6  ;;  %v842_v8 = vld [vmem:[#allocation7] sm:$0xff] }
 0x11e   :  { %1328 = vmatprep.subr.mxu1 %v869_v18  ;;  %1298 = vmatpush3.msra.mxu0 %v883_v19 }
 0x11f   :  { %1329 = vmatpush3.msra.mxu1 %v853_v20  ;;  %1299 = vmatprep.subr.mxu0 %v898_v24 }
 0x120   :  { %1330 = vmatprep.subr.mxu1 %v868_v25  ;;  %1300 = vmatpush3.msra.mxu0 %v882_v27 }
 0x121   :  { %1482 = vrot.lane.b32.xlu0 %v1481_v26, %s1685_s10  ;;  %1492 = vrot.lane.b32.xlu1 %v1491_v21, %s1684_s6 }
 0x122   :  { %1331 = vmatpush3.msra.mxu1 %v852_v28  ;;  %1301 = vmatprep.subr.mxu0 %v897_v29 }
 0x123   :  { %1332 = vmatprep.subr.mxu1 %v867_v30  ;;  %1302 = vmatpush3.msra.mxu0 %v881_v34 }
 0x124   :  { %1333 = vmatpush3.msra.mxu1 %v851_v35  ;;  %1303 = vmatprep.subr.mxu0 %v896_v36 }
 0x125   :  { %1497 = vrot.lane.b32.xlu0 %v1496_v31, %s1685_s10  ;;  %1502 = vrot.lane.b32.xlu1 %v1501_v33, %s1683_s5 }
 0x126   :  { %1334 = vmatprep.subr.mxu1 %v866_v37  ;;  %1304 = vmatpush3.msra.mxu0 %v880_v38  ;;  %v1076_v37 = vld [vmem:[#allocation10 + $0xf0] sm:$0xff] }
 0x127   :  { %1335 = vmatpush3.msra.mxu1 %v850_v39  ;;  %1305 = vmatprep.subr.mxu0 %v895_v40  ;;  %v1060_v38 = vld [vmem:[#allocation10 + $0x70] sm:$0xff]  ;;  %v1075_v40 = vld [vmem:[#allocation10 + $0xe8] sm:$0xff] }
 0x128   :  { %1336 = vmatprep.subr.mxu1 %v865_v43  ;;  %1306 = vmatpush3.msra.mxu0 %v879_v44 }
 0x129   :  { %1337 = vmatpush3.msra.mxu1 %v849_v45  ;;  %1307 = vmatprep.subr.mxu0 %v894_v46  ;;  %v1161_v45 = vld [vmem:[#allocation11 + $0x58] sm:$0xff]  ;;  %v1074_v46 = vld [vmem:[#allocation10 + $0xe0] sm:$0xff] }
 0x12a   :  { %1338 = vmatprep.subr.mxu1 %v864_v47  ;;  %1308 = vmatpush3.msra.mxu0 %v878_v48  ;;  %v1058_v47 = vld [vmem:[#allocation10 + $0x60] sm:$0xff]  ;;  %v1160_v48 = vld [vmem:[#allocation11 + $0x50] sm:$0xff] }
 0x12b   :  { %1339 = vmatpush3.msra.mxu1 %v848_v49  ;;  %1309 = vmatprep.subr.mxu0 %v893_v50  ;;  %v1073_v49 = vld [vmem:[#allocation10 + $0xd8] sm:$0xff] }
 0x12c   :  { %1340 = vmatprep.subr.mxu1 %v863_v51  ;;  %1310 = vmatpush3.msra.mxu0 %v877_v52  ;;  %v1057_v50 = vld [vmem:[#allocation10 + $0x58] sm:$0xff]  ;;  %v1159_v51 = vld [vmem:[#allocation11 + $0x48] sm:$0xff]  ;;  %v1072_v52 = vld [vmem:[#allocation10 + $0xd0] sm:$0xff] }
 0x12d   :  { %1341 = vmatpush3.msra.mxu1 %v847_v53  ;;  %1311 = vmatprep.subr.mxu0 %v892_v54  ;;  %v1056_v53 = vld [vmem:[#allocation10 + $0x50] sm:$0xff]  ;;  %v1158_v54 = vld [vmem:[#allocation11 + $0x40] sm:$0xff] }
 0x12e   :  { %1342 = vmatprep.subr.mxu1 %v862_v56  ;;  %1312 = vmatpush3.msra.mxu0 %v876_v57  ;;  %v1071_v56 = vld [vmem:[#allocation10 + $0xc8] sm:$0xff] }
 0x12f   :  { %1343 = vmatpush3.msra.mxu1 %v846_v58  ;;  %1313 = vmatprep.subr.mxu0 %v891_v59  ;;  %v1055_v57 = vld [vmem:[#allocation10 + $0x48] sm:$0xff]  ;;  %v1070_v58 = vld [vmem:[#allocation10 + $0xc0] sm:$0xff] }
 0x130   :  { %1344 = vmatprep.subr.mxu1 %v861_v60  ;;  %1314 = vmatpush3.msra.mxu0 %v875_v61  ;;  %v1054_v59 = vld [vmem:[#allocation10 + $0x40] sm:$0xff]  ;;  %v1069_v60 = vld [vmem:[#allocation10 + $0xb8] sm:$0xff] }
 0x131   :  { %1345 = vmatpush3.msra.mxu1 %v845_v63  ;;  %1315 = vmatprep.subr.mxu0 %v890_v0  ;;  %v1053_v61 = vld [vmem:[#allocation10 + $0x38] sm:$0xff]  ;;  %v1068_v63 = vld [vmem:[#allocation10 + $0xb0] sm:$0xff] }
 0x132   :  { %1346 = vmatprep.subr.mxu1 %v860_v2  ;;  %1316 = vmatpush3.msra.mxu0 %v874_v3  ;;  %v1052_v0 = vld [vmem:[#allocation10 + $0x30] sm:$0xff]  ;;  %v1067_v2 = vld [vmem:[#allocation10 + $0xa8] sm:$0xff] }
 0x133   :  { %1347 = vmatpush3.msra.mxu1 %v844_v4  ;;  %1355 = vmatprep.subr.mxu0 %v1077_v9  ;;  %v1051_v3 = vld [vmem:[#allocation10 + $0x28] sm:$0xff]  ;;  %v1050_v9 = vld [vmem:[#allocation10 + $0x20] sm:$0xff] }
 0x134   :  { %1348 = vmatprep.subr.mxu1 %v859_v5 }
 0x135   :  { %1349 = vmatpush3.msra.mxu1 %v843_v6  ;;  %v1157_v6 = vld [vmem:[#allocation11 + $0x38] sm:$0xff] }
 0x136   :  { %1350 = vmatprep.subr.mxu1 %v858_v7 }
 0x137   :  { %1351 = vmatpush3.msra.mxu1 %v842_v8  ;;  %v1066_v8 = vld [vmem:[#allocation10 + $0xa0] sm:$0xff] }
 0x138   :  { %1433 = vmatprep.subr.mxu1 %v1679_v1 }
 0x18f   :  { %v1488_v11 = vpop.permute.xlu1 %1487  ;;  %v1478_v14 = vpop.permute.xlu0 %1477 }
 0x190   :  { %v1480_v15 = vunpack.i.h.bf16 %v1478_v14  ;;  %v1479_v17 = vunpack.i.l.bf16 %v1478_v14  ;;  %v1490_v21 = vunpack.i.h.bf16 %v1488_v11  ;;  %v1489_v22 = vunpack.i.l.bf16 %v1488_v11  ;;  %v1156_v11 = vld [vmem:[#allocation11 + $0x30] sm:$0xff] }
 0x192   :  { %v740_v23 = vsel %vm641_vm2, %v1824_v55, %v1480_v15  ;;  %v743_v24 = vsel %vm641_vm2, %v1828_v62, %v1479_v17  ;;  %v1061_v55 = vld [vmem:[#allocation10 + $0x78] sm:$0xff] }
 0x193   :  { %v1483_v12 = vpop.permute.xlu0 %1482  ;;  %v1493_v13 = vpop.permute.xlu1 %1492  ;;  %v1065_v15 = vld [vmem:[#allocation10 + $0x98] sm:$0xff] }
 0x194   :  { %v1485_v16 = vunpack.i.h.bf16 %v1483_v12  ;;  %v1484_v18 = vunpack.i.l.bf16 %v1483_v12  ;;  %v1495_v19 = vunpack.i.h.bf16 %v1493_v13  ;;  %v1494_v20 = vunpack.i.l.bf16 %v1493_v13  ;;  %v1049_v12 = vld [vmem:[#allocation10 + $0x18] sm:$0xff]  ;;  %v1155_v13 = vld [vmem:[#allocation11 + $0x28] sm:$0xff] }
 0x196   :  { %v744_v25 = vsel %vm643_vm3, %v743_v24, %v1484_v18  ;;  %v741_v26 = vsel %vm643_vm3, %v740_v23, %v1485_v16  ;;  %v642_v27 = vsel %vm641_vm2, %v1812_v41, %v1495_v19  ;;  %v647_v33 = vsel %vm641_vm2, %v1815_v42, %v1494_v20  ;;  %v1059_v42 = vld [vmem:[#allocation10 + $0x68] sm:$0xff]  ;;  %v1064_v20 = vld [vmem:[#allocation10 + $0x90] sm:$0xff]  ;;  %v1154_v23 = vld [vmem:[#allocation11 + $0x20] sm:$0xff] }
 0x197   :  { %v1498_v28 = vpop.permute.xlu0 %1497  ;;  %v1503_v29 = vpop.permute.xlu1 %1502  ;;  %v745_v30 = vsel %vm645_vm4, %v744_v25, %v1489_v22  ;;  %v742_v31 = vsel %vm645_vm4, %v741_v26, %v1490_v21  ;;  %v1048_v22 = vld [vmem:[#allocation10 + $0x10] sm:$0xff] }
 0x198   :  { %v1500_v34 = vunpack.i.h.bf16 %v1498_v28  ;;  %v1499_v35 = vunpack.i.l.bf16 %v1498_v28  ;;  %v1505_v62 = vunpack.i.h.bf16 %v1503_v29  ;;  %v1504_v36 = vunpack.i.l.bf16 %v1503_v29  ;;  %970 = vmatprep.mubr.f32.mxu0 %v745_v30  ;;  %v1047_v28 = vld [vmem:[#allocation10 + $0x8] sm:$0xff]  ;;  %v1153_v29 = vld [vmem:[#allocation11 + $0x18] sm:$0xff] }
 0x199   :  { %971 = vmatmul.mubr.f32.vlgmr.msra.gmra.mxu0 %v742_v31 }
 0x19a   :  { %v648_v41 = vsel %vm643_vm3, %v647_v33, %v1499_v35  ;;  %v644_v39 = vsel %vm643_vm3, %v642_v27, %v1500_v34  ;;  %1356 = vmatpush3.msra.mxu0 %v1061_v55  ;;  %v1063_v27 = vld [vmem:[#allocation10 + $0x88] sm:$0xff]  ;;  %v1062_v55 = vld [vmem:[#allocation10 + $0x80] sm:$0xff] }
 0x19b   :  { %v649_v43 = vsel %vm645_vm4, %v648_v41, %v1504_v36  ;;  %v646_v44 = vsel %vm645_vm4, %v644_v39, %v1505_v62  ;;  %1357 = vmatprep.subr.mxu0 %v1076_v37  ;;  %v1046_v34 = vld [vmem:[#allocation10] sm:$0xff]  ;;  %v1151_v37 = vld [vmem:[#allocation11 + $0x8] sm:$0xff] }
 0x19c   :  { %1040 = vmatprep.mubr.f32.mxu1 %v649_v43  ;;  %1358 = vmatpush3.msra.mxu0 %v1060_v38 }
 0x19d   :  { %1041 = vmatmul.mubr.f32.vlgmr.msra.gmra.mxu1 %v646_v44  ;;  %1359 = vmatprep.subr.mxu0 %v1075_v40  ;;  %v1150_v40 = vld [vmem:[#allocation11] sm:$0xff] }
 0x19e   :  { %1360 = vmatpush3.msra.mxu0 %v1059_v42  ;;  %1434 = vmatpush3.msra.mxu1 %v1161_v45 }
 0x19f   :  { %1361 = vmatprep.subr.mxu0 %v1074_v46  ;;  %1435 = vmatprep.subr.mxu1 %v1679_v1 }
 0x1a0   :  { %1362 = vmatpush3.msra.mxu0 %v1058_v47  ;;  %1436 = vmatpush3.msra.mxu1 %v1160_v48 }
 0x1a1   :  { %1363 = vmatprep.subr.mxu0 %v1073_v49  ;;  %1437 = vmatprep.subr.mxu1 %v1679_v1 }
 0x1a2   :  { %1364 = vmatpush3.msra.mxu0 %v1057_v50  ;;  %1438 = vmatpush3.msra.mxu1 %v1159_v51 }
 0x1a3   :  { %1365 = vmatprep.subr.mxu0 %v1072_v52  ;;  %1439 = vmatprep.subr.mxu1 %v1679_v1 }
 0x1a4   :  { %1366 = vmatpush3.msra.mxu0 %v1056_v53  ;;  %1440 = vmatpush3.msra.mxu1 %v1158_v54 }
 0x1a5   :  { %1367 = vmatprep.subr.mxu0 %v1071_v56  ;;  %1441 = vmatprep.subr.mxu1 %v1679_v1 }
 0x1a6   :  { %1368 = vmatpush3.msra.mxu0 %v1055_v57  ;;  %1457 = vmatprep.mubr.msk.f32.mxu1 %vm1681_vm0, %v1679_v1 }
 0x1a7   :  { %1369 = vmatprep.subr.mxu0 %v1070_v58  ;;  %1442 = vmatpush3.msra.mxu1 %v1157_v6 }
 0x1a8   :  { %1370 = vmatpush3.msra.mxu0 %v1054_v59  ;;  %1443 = vmatprep.subr.mxu1 %v1679_v1 }
 0x1a9   :  { %1371 = vmatprep.subr.mxu0 %v1069_v60  ;;  %1444 = vmatpush3.msra.mxu1 %v1156_v11 }
 0x1aa   :  { %1372 = vmatpush3.msra.mxu0 %v1053_v61  ;;  %1445 = vmatprep.subr.mxu1 %v1679_v1 }
 0x1ab   :  { %1373 = vmatprep.subr.mxu0 %v1068_v63  ;;  %1446 = vmatpush3.msra.mxu1 %v1155_v13 }
 0x1ac   :  { %1374 = vmatpush3.msra.mxu0 %v1052_v0  ;;  %1447 = vmatprep.subr.mxu1 %v1679_v1 }
 0x1ad   :  { %1375 = vmatprep.subr.mxu0 %v1067_v2  ;;  %1448 = vmatpush3.msra.mxu1 %v1154_v23 }
 0x1ae   :  { %1376 = vmatpush3.msra.mxu0 %v1051_v3  ;;  %1449 = vmatprep.subr.mxu1 %v1679_v1 }
 0x1af   :  { %1377 = vmatprep.subr.mxu0 %v1066_v8  ;;  %1450 = vmatpush3.msra.mxu1 %v1153_v29 }
 0x1b0   :  { %1378 = vmatpush3.msra.mxu0 %v1050_v9  ;;  %1451 = vmatprep.subr.mxu1 %v1679_v1 }
 0x1b1   :  { %1379 = vmatprep.subr.mxu0 %v1065_v15  ;;  %v1272_v15 = vld [vmem:[%s1925_s7] ss:$0 sm:$0xff] }
 0x1b2   :  { %1380 = vmatpush3.msra.mxu0 %v1049_v12 }
 0x1b3   :  { %1381 = vmatprep.subr.mxu0 %v1064_v20 }
 0x1b4   :  { %1382 = vmatpush3.msra.mxu0 %v1048_v22 }
 0x1b5   :  { %1383 = vmatprep.subr.mxu0 %v1063_v27 }
 0x1b6   :  { %1384 = vmatpush3.msra.mxu0 %v1047_v28 }
 0x1b7   :  { %1385 = vmatprep.subr.mxu0 %v1062_v55 }
 0x1b8   :  { %1386 = vmatpush3.msra.mxu0 %v1046_v34 }
 0x1cf   :  { %v472_v4 = vpop.f32.mrf.mxu0 }
 0x1d0   :  { %v746_v7 = vcombine.high %v472_v4, %v1679_v1  ;;  %v753_v14 = vrot.slane %v472_v4, %v1775_v10 }
 0x1d1   :  { %v1427_v5 = vpop.f32.mrf.mxu0 }
 0x1d2   :  { %v760_v16 = vrot.slane %v746_v7, %v1775_v10 }
 0x1d5   :  { %v545_v17 = vpop.f32.mrf.mxu1 }
 0x1d6   :  { %v761_v18 = vcombine.high %v545_v17, %v1679_v1  ;;  %v768_v19 = vrot.slane %v545_v17, %v1775_v10 }
 0x1d7   :  { %v1432_v21 = vpop.f32.mrf.mxu1 }
 0x1d8   :  { %v775_v24 = vrot.slane %v761_v18, %v1775_v10  ;;  %v776_v25 = vcombine.low %v753_v14, %v768_v19  ;;  %v777_v26 = vcombine.high %v753_v14, %v768_v19  ;;  %v1152_v10 = vld [vmem:[#allocation11 + $0x10] sm:$0xff] }
 0x1d9   :  { %1452 = vmatpush3.msra.mxu1 %v1152_v10 }
 0x1da   :  { %v784_v30 = vrot.slane %v776_v25, %v1806_v32  ;;  %v792_v31 = vcombine.low %v760_v16, %v775_v24  ;;  %v793_v33 = vcombine.high %v760_v16, %v775_v24  ;;  %v791_v35 = vrot.slane %v777_v26, %v1806_v32  ;;  %1453 = vmatprep.subr.mxu1 %v1679_v1 }
 0x1db   :  { %1454 = vmatpush3.msra.mxu1 %v1151_v37 }
 0x1dc   :  { %v800_v62 = vrot.slane %v792_v31, %v1806_v32  ;;  %v807_v36 = vrot.slane %v793_v33, %v1806_v32  ;;  %v808_v41 = vcombine.high %v784_v30, %v1679_v1  ;;  %v1149_v32 = vld [vmem:[%s1920_s2] sm:$0x3]  ;;  %1455 = vmatprep.subr.mxu1 %v1679_v1  ;;  %v809_v42 = vcombine.high %v791_v35, %v1679_v1 }
 0x1dd   :  { %1456 = vmatpush3.msra.mxu1 %v1150_v40 }
 0x1de   :  { %v1511_v38 = vpack.i.bf16 %v791_v35, %v807_v36  ;;  %v810_v39 = vcombine.high %v800_v62, %v1679_v1  ;;  %v811_v44 = vcombine.high %v807_v36, %v1679_v1  ;;  %1458 = vmatmul.mubr.msk.f32.vlgmr.msra.gmra.mxu1 %vm645_vm4, %v1149_v32 }
 0x1e0   :  { %1512 = vrot.lane.b32.xlu1 %v1511_v38, %s1685_s10  ;;  %v1506_v43 = vpack.i.bf16 %v808_v41, %v810_v39  ;;  %v1516_v45 = vpack.i.bf16 %v809_v42, %v811_v44 }
 0x1e2   :  { %1507 = vrot.lane.b32.xlu0 %v1506_v43, %s1684_s6 }
 0x1e6   :  { %1517 = vrot.lane.b32.xlu0 %v1516_v45, %s1683_s5 }
 0x252   :  { %v1513_v47 = vpop.permute.xlu1 %1512 }
 0x253   :  { %v1515_v52 = vunpack.i.h.bf16 %v1513_v47  ;;  %v1514_v53 = vunpack.i.l.bf16 %v1513_v47 }
 0x254   :  { %v1508_v46 = vpop.permute.xlu0 %1507 }
 0x255   :  { %v1510_v48 = vunpack.i.h.bf16 %v1508_v46  ;;  %v1509_v49 = vunpack.i.l.bf16 %v1508_v46 }
 0x257   :  { %v836_v50 = vsel %vm641_vm2, %v784_v30, %v1510_v48  ;;  %v839_v51 = vsel %vm641_vm2, %v800_v62, %v1509_v49 }
 0x258   :  { %v1518_v54 = vpop.permute.xlu0 %1517  ;;  %v840_v1 = vsel %vm643_vm3, %v839_v51, %v1514_v53  ;;  %v837_v58 = vsel %vm643_vm3, %v836_v50, %v1515_v52 }
 0x259   :  { %v1520_v56 = vunpack.i.h.bf16 %v1518_v54  ;;  %v1519_v57 = vunpack.i.l.bf16 %v1518_v54  ;;  %v1317_v3 = vpop.f32.mrf.mxu0 }
 0x25b   :  { %v841_v59 = vsel %vm645_vm4, %v840_v1, %v1519_v57  ;;  %v838_v60 = vsel %vm645_vm4, %v837_v58, %v1520_v56  ;;  %v1318_v4 = vpop.f32.mrf.mxu0 }
 0x25c   :  { %1142 = vmatprep.mubr.f32.mxu0 %v841_v59  ;;  %v1319_v7 = vadd.f32 %v1318_v4, %v1317_v3 }
 0x25d   :  { %1143 = vmatmul.mubr.f32.vlgmr.msra.gmra.mxu0 %v838_v60  ;;  %v1352_v61 = vpop.f32.mrf.mxu1 }
 0x25f   :  { %v1353_v63 = vpop.f32.mrf.mxu1 }
 0x260   :  { %v1354_v5 = vadd.f32 %v1353_v63, %v1352_v61 }
 0x262   :  { %v1043_v9 = vadd.f32 %v1354_v5, %v1319_v7 }
 0x29e   :  { %v1231_v0 = vpop.f32.mrf.mxu1 }
 0x2a0   :  { %v1459_v2 = vpop.f32.mrf.mxu1 }
 0x31d   :  { %v1387_v6 = vpop.f32.mrf.mxu0 }
 0x31f   :  { %v1388_v8 = vpop.f32.mrf.mxu0 }
 0x320   :  { %v1389_v11 = vadd.f32 %v1388_v8, %v1387_v6 }
 0x322   :  { %v1148_v14 = vadd.f32 %v1389_v11, %v1043_v9 }
 0x324   :  { %v1235_v17 = vadd.f32 %v1231_v0, %v1148_v14 }
 0x326   :  { %v1243_v12 = vadd.f32 %v1272_v15, %v1235_v17 }
 0x328   :  { %1244 = vst [vmem:[#allocation13] sm:$0x3] %v1243_v12 }
 0x329   :  { %1652 = shalt.err (!%p1649_p6)
}
 0x32a   :  { %1254 = dma.vmem_to_hbm [thread:$0]  %s1252_s16, 32, %s1926_s8, [#allocation4]  }
 0x32b   :  { %1669 = dma.done.wait [#allocation4], 32  }
 0x32c   :  { %1670 = vsyncadd [#allocation4], 4294967264 }
 0x32d   :  { %1258 = vsyncpa [#allocation3], 1 }
 0x32e   :  { %1259 = vsyncpa [#allocation6], 1 }
 0x32f   :  { %1260 = vsyncpa [#allocation9], 1 }
 0x330   :  { %1261 = vsyncpa [#allocation12], 1 }
 0x331   :  { %1262 = vsyncpa [#allocation4], 1 }

</bundles_post_ra>
